<compile_context>
chip_gen: v5e
topology: v5e:2x2
jax: 0.10.0
libtpu: 0.0.40
codegen_flags: <defaults>
</compile_context>

<pallas_src>
import jax
import jax.numpy as jnp
from jax.experimental import pallas as pl
from jax.experimental.pallas import tpu as pltpu


# --------------------------------------------------------------------------
# kernel 1: fused g/phi 1x1 conv (stacked weights) + 2x2 max-pool
# --------------------------------------------------------------------------
def _gphi_pool_kernel(x_ref, w_ref, b_ref, sel_e_ref, sel_o_ref, g_ref, pt_ref):
    """Channels-first conv + pool on a block of `rpp` image-row pairs.

    x_ref:     (C, BP)        BP = rpp*2*W spatial positions, native NCHW layout
    w_ref:     (2*Ci, C)      [wg ; wp] stacked -> one MXU pass over x
    b_ref:     (2*Ci, 1)      f32 bias
    sel_*_ref: (W, Wp)        0/1 even / odd column selection matrices (f32)
    g_ref:     (rpp*Wp, Ci)   pooled g block in (N2, Ci) layout (for attn @ g)
    pt_ref:    (Ci, rpp*Wp)   pooled phi block in (Ci, N2) layout (for theta @ phi)
    """
    w_full, wp_half = sel_e_ref.shape                 # W, Wp
    ci = g_ref.shape[-1]
    rpp = pt_ref.shape[-1] // wp_half

    x = x_ref[...].astype(w_ref.dtype)                # bf16 cast on the fast path
    y = (jnp.dot(w_ref[...], x, preferred_element_type=jnp.float32)
         + b_ref[...])                                # (2Ci, BP), f32 accumulate

    sel_e = sel_e_ref[...]
    sel_o = sel_o_ref[...]
    # Static unroll; rpp is kept small by _choose_rpp.  The tiny 0/1 selection
    # matmuls cost ~W/(2C) of the main conv matmul.
    for r in range(rpp):
        top = y[:, r * 2 * w_full: r * 2 * w_full + w_full]          # image row 2r
        bot = y[:, r * 2 * w_full + w_full: (r + 1) * 2 * w_full]    # image row 2r+1
        hmax = jnp.maximum(top, bot)                  # pool along H -> (2Ci, W)
        pooled = jnp.maximum(                         # pool along W (exact selection)
            jnp.dot(hmax, sel_e, preferred_element_type=jnp.float32),
            jnp.dot(hmax, sel_o, preferred_element_type=jnp.float32))  # (2Ci, Wp)
        g_ref[r * wp_half:(r + 1) * wp_half, :] = pooled[:ci, :].T.astype(g_ref.dtype)
        pt_ref[:, r * wp_half:(r + 1) * wp_half] = pooled[ci:, :].astype(pt_ref.dtype)


# --------------------------------------------------------------------------
# kernel 2: theta conv + attention + (W conv with BN folded) + residual
# --------------------------------------------------------------------------
def _nonlocal_attn_kernel(x_ref, wt_ref, bt_ref, g_ref, pt_ref, ww_ref, bw_ref,
                          z_ref):
    """Per query tile, native-layout in/out.

    x_ref:  (C, TQ)    query tile in native (B, C, N) layout
    wt_ref: (C, Ci)    theta weight (bf16 on the fast path)
    g_ref:  (N2, Ci)   pooled g   (VMEM-resident across query tiles)
    pt_ref: (Ci, N2)   pooled phi, pre-transposed by kernel 1 (no per-tile relayout)
    ww_ref: (Ci, C)    W-conv weight with eval-mode BatchNorm folded in
    z_ref:  (C, TQ)    output tile, native layout
    """
    cdt = wt_ref.dtype                                # MXU operand dtype
    approx = cdt != jnp.float32

    x_t = x_ref[...]                                  # (C, TQ)
    x = x_t.T                                         # (TQ, C): XLU transpose replaces
                                                      # a full-HBM wrapper transpose
    theta = (jnp.dot(x.astype(cdt), wt_ref[...],
                     preferred_element_type=jnp.float32) + bt_ref[...])   # (TQ, Ci)

    # f = theta @ phi  -- phi already (Ci, N2): natural MXU orientation.
    f = jnp.dot(theta.astype(cdt), pt_ref[...],
                preferred_element_type=jnp.float32)   # (TQ, N2) f32

    # Exact softmax over keys; exp/max/sum kept in f32 (cheap, v5e-safe).
    f = f - jnp.max(f, axis=-1, keepdims=True)
    e = jnp.exp(f)
    inv = pl.reciprocal(jnp.sum(e, axis=-1, keepdims=True), approx=approx)

    # Defer normalization past the PV matmul: scale the (TQ, Ci) result instead
    # of the (TQ, N2) matrix (removes TQ*N2 VPU multiplies + one f32 temporary).
    y = jnp.dot(e.astype(cdt), g_ref[...],
                preferred_element_type=jnp.float32) * inv                 # (TQ, Ci)

    wy = (jnp.dot(y.astype(cdt), ww_ref[...],
                  preferred_element_type=jnp.float32) + bw_ref[...])      # (TQ, C)
    z = wy + x.astype(jnp.float32)                    # residual
    z_ref[...] = z.T.astype(z_ref.dtype)              # back to native (C, TQ)


# --------------------------------------------------------------------------
# tiling heuristics
# --------------------------------------------------------------------------
def _tpu_vmem_bytes():
    try:
        return int(pltpu.get_tpu_info().vmem_capacity_bytes)
    except Exception:
        return 64 << 20                               # conservative (v7x-sized) fallback


def _choose_rpp(batch, hp, wp, c, itemsize):
    """Largest legal row-pair count whose x block stays under a modest VMEM
    budget (streaming kernel 1 wants >=512-position blocks for HBM roofline).
    Legality: last-dim blocks must be multiples of 128 or the full extent."""
    legal = [r for r in range(1, hp + 1)
             if hp % r == 0 and (r == hp or (r * wp) % 128 == 0)]
    budget = 4 << 20                                  # x-block bytes (Pallas double-buffers)
    under = [r for r in legal if r * 4 * wp * c * itemsize <= budget]
    cands = under if under else legal[:1]             # legal[0] is the smallest legal
    rpp = max(cands)
    if batch * (hp // rpp) < 2:                       # keep >=2 steps for megacore sharding
        smaller = [r for r in cands if batch * (hp // r) >= 2]
        if smaller:
            rpp = max(smaller)
    return rpp


def _choose_query_tile(n, cap):
    """Largest multiple-of-128 divisor of n that is <= cap (prefer >=2 tiles)."""
    best = None
    start = max(128, cap - cap % 128)
    for tq in range(start, 127, -128):
        if n % tq == 0:
            if n // tq >= 2:
                return tq
            if best is None:
                best = tq
    return best if best is not None else n


# --------------------------------------------------------------------------
# wrapper
# --------------------------------------------------------------------------
def nonlocal_block_egaussian(x_nchw, params, *, query_tile=None,
                             compute_dtype=jnp.bfloat16):
    """Forward of _NonLocalBlock2D_EGaussian (sub_sample=True, bn_layer=True,
    eval-mode BN).  MXU matmuls use `compute_dtype` operands with f32
    accumulation; pass compute_dtype=jnp.float32 for a bit-faithful path."""
    B, C, H, W = x_nchw.shape
    Ci = params["wg"].shape[0]
    assert H % 2 == 0 and W % 2 == 0, "2x2 max-pool fusion assumes even H, W"
    # TODO(synk): odd H/W would need PyTorch MaxPool2d floor semantics (edge drop).
    N = H * W
    Hp, Wp = H // 2, W // 2
    N2 = Hp * Wp
    dt = x_nchw.dtype
    store_dt = compute_dtype          # pooled g / phi dtype (bf16 on the fast path)

    # Native NCHW layout flattened over space: (B, C, N) -- a reshape only.
    x_nat = x_nchw.reshape(B, C, N)

    # g & phi 1x1 convs stacked into one (2Ci, C) weight -> single MXU pass over x.
    w_gp = jnp.concatenate([params["wg"], params["wp"]], axis=0).astype(compute_dtype)
    b_gp = jnp.concatenate([params["bg"], params["bp"]]).reshape(2 * Ci, 1).astype(jnp.float32)
    # theta 1x1 conv (applied channels-last inside kernel 2).
    wt_t = params["wt"].T.astype(compute_dtype)                       # (C, Ci)
    bt = params["bt"].reshape(1, Ci).astype(jnp.float32)
    # W 1x1 conv with eval-mode BatchNorm folded into its weights.
    eps = 1e-5
    scale = params["bn_gamma"] / jnp.sqrt(params["bn_var"] + eps)
    shift = params["bn_beta"] - params["bn_mean"] * scale
    ww_fold = (params["ww"].T * scale[None, :]).astype(compute_dtype)  # (Ci, C)
    bw_fold = (params["bw"] * scale + shift).reshape(1, C).astype(jnp.float32)

    # 0/1 selection matrices for the W-direction half of the 2x2 max-pool.
    cols = jnp.arange(W)[:, None]
    outs = jnp.arange(Wp)[None, :]
    sel_even = (cols == 2 * outs).astype(jnp.float32)                 # (W, Wp)
    sel_odd = (cols == 2 * outs + 1).astype(jnp.float32)

    # Generation-dependent VMEM budget / query-tile cap.
    vmem_cap = _tpu_vmem_bytes()
    if vmem_cap >= (100 << 20):                    # v5e / v6e: 128 MiB physical VMEM
        tq_cap, vmem_limit = 512, 80 << 20
    else:                                          # v7x: 64 MiB per TensorCore
        tq_cap, vmem_limit = 256, 44 << 20
    cparams = pltpu.CompilerParams(
        dimension_semantics=("parallel", "parallel"),
        vmem_limit_bytes=vmem_limit)

    # --- kernel 1: fused g/phi 1x1 conv + 2x2 max-pool -----------------------
    rpp = _choose_rpp(B, Hp, Wp, C, jnp.dtype(dt).itemsize)
    g_pool, phit_pool = pl.pallas_call(
        _gphi_pool_kernel,
        out_shape=(jax.ShapeDtypeStruct((B, N2, Ci), store_dt),
                   jax.ShapeDtypeStruct((B, Ci, N2), store_dt)),
        grid=(B, Hp // rpp),
        in_specs=[
            pl.BlockSpec((None, C, rpp * 2 * W), lambda b, h: (b, 0, h)),
            pl.BlockSpec((2 * Ci, C), lambda b, h: (0, 0)),
            pl.BlockSpec((2 * Ci, 1), lambda b, h: (0, 0)),
            pl.BlockSpec((W, Wp), lambda b, h: (0, 0)),
            pl.BlockSpec((W, Wp), lambda b, h: (0, 0)),
        ],
        out_specs=(
            pl.BlockSpec((None, rpp * Wp, Ci), lambda b, h: (b, h, 0)),
            pl.BlockSpec((None, Ci, rpp * Wp), lambda b, h: (b, 0, h)),
        ),
        compiler_params=cparams,
    )(x_nat, w_gp, b_gp, sel_even, sel_odd)

    # --- kernel 2: attention, tiled over query positions ---------------------
    # Shrink the tile cap if the per-tile f32 temporaries would not fit VMEM.
    resident = 4 * N2 * Ci * jnp.dtype(store_dt).itemsize     # g + phi, double-buffered
    while tq_cap > 128 and (3 * tq_cap * N2 * 4 + 4 * C * tq_cap * 4
                            + resident) > int(0.75 * vmem_limit):
        tq_cap //= 2
    TQ = query_tile if query_tile is not None else _choose_query_tile(N, tq_cap)
    assert N % TQ == 0
    # TODO(synk): very large N2 would need a keys-tiled (online-softmax) variant;
    # here the full pooled phi/g stay VMEM-resident across query tiles.
    # (pipeline_mode=pl.Buffered(1) on the resident/weight specs would save their
    #  redundant second buffer on v7x; left at the default for portability.)

    z_nat = pl.pallas_call(
        _nonlocal_attn_kernel,
        out_shape=jax.ShapeDtypeStruct((B, C, N), dt),
        grid=(B, N // TQ),
        in_specs=[
            pl.BlockSpec((None, C, TQ), lambda b, q: (b, 0, q)),      # x tile
            pl.BlockSpec((C, Ci), lambda b, q: (0, 0)),               # wt
            pl.BlockSpec((1, Ci), lambda b, q: (0, 0)),               # bt
            pl.BlockSpec((None, N2, Ci), lambda b, q: (b, 0, 0)),     # g     (resident)
            pl.BlockSpec((None, Ci, N2), lambda b, q: (b, 0, 0)),     # phi^T (resident)
            pl.BlockSpec((Ci, C), lambda b, q: (0, 0)),               # ww (BN folded)
            pl.BlockSpec((1, C), lambda b, q: (0, 0)),                # bw (BN folded)
        ],
        out_specs=pl.BlockSpec((None, C, TQ), lambda b, q: (b, 0, q)),
        compiler_params=cparams,
    )(x_nat, wt_t, bt, g_pool, phit_pool, ww_fold, bw_fold)

    return z_nat.reshape(B, C, H, W)


# --------------------------------------------------------------------------
# pure-JAX reference (mirrors the PyTorch forward, eval-mode BN)
# --------------------------------------------------------------------------
def reference_forward(x, params):
    B, C, H, W = x.shape
    Ci = params["wg"].shape[0]
    eps = 1e-5

    def conv1x1(v, w, b):
        return jnp.einsum('bchw,oc->bohw', v, w) + b[None, :, None, None]

    def pool(v):
        Bp, Cp, Hh, Ww = v.shape
        return jnp.max(v.reshape(Bp, Cp, Hh // 2, 2, Ww // 2, 2), axis=(3, 5))

    g_x = pool(conv1x1(x, params["wg"], params["bg"])).reshape(B, Ci, -1)
    g_x = jnp.transpose(g_x, (0, 2, 1))                              # (B, N2, Ci)
    theta_x = conv1x1(x, params["wt"], params["bt"]).reshape(B, Ci, -1)
    theta_x = jnp.transpose(theta_x, (0, 2, 1))                      # (B, N, Ci)
    phi_x = pool(conv1x1(x, params["wp"], params["bp"])).reshape(B, Ci, -1)

    f = jnp.einsum('bnc,bcm->bnm', theta_x, phi_x)                   # (B, N, N2)
    f_div_C = jax.nn.softmax(f, axis=-1)
    y = jnp.einsum('bnm,bmc->bnc', f_div_C, g_x)                     # (B, N, Ci)
    y = jnp.transpose(y, (0, 2, 1)).reshape(B, Ci, H, W)

    W_y = conv1x1(y, params["ww"], params["bw"])
    W_y = ((W_y - params["bn_mean"][None, :, None, None])
           / jnp.sqrt(params["bn_var"][None, :, None, None] + eps)
           * params["bn_gamma"][None, :, None, None]
           + params["bn_beta"][None, :, None, None])
    return W_y + x


if __name__ == "__main__":
    key = jax.random.PRNGKey(0)
    B, C, H, W = 2, 4, 16, 16          # in_channels=4 -> inter_channels=2
    Ci = C // 2
    ks = jax.random.split(key, 12)
    u = lambda k, shape, s=0.5: jax.random.uniform(k, shape, jnp.float32, -s, s)

    params = {
        "wg": u(ks[0], (Ci, C)), "bg": u(ks[1], (Ci,)),
        "wt": u(ks[2], (Ci, C)), "bt": u(ks[3], (Ci,)),
        "wp": u(ks[4], (Ci, C)), "bp": u(ks[5], (Ci,)),
        "ww": u(ks[6], (C, Ci)), "bw": u(ks[7], (C,)),
        # The PyTorch module initializes BN affine params to 0 (z == x exactly);
        # nonzero values exercise the full compute path.  Eval-mode BN with
        # running_mean=0, running_var=1.
        "bn_gamma": u(ks[8], (C,)) + 1.0,
        "bn_beta": u(ks[9], (C,)),
        "bn_mean": jnp.zeros((C,), jnp.float32),
        "bn_var": jnp.ones((C,), jnp.float32),
    }
    x = u(ks[10], (B, C, H, W), 1.0)

    z_ref = reference_forward(x, params)

    # Bit-faithful f32 path: validates kernel structure exactly.
    z32 = jax.block_until_ready(
        nonlocal_block_egaussian(x, params, compute_dtype=jnp.float32))
    assert z32.shape == x.shape and z32.dtype == x.dtype
    err32 = float(jnp.max(jnp.abs(z32 - z_ref)))
    assert jnp.allclose(z32, z_ref, rtol=1e-5, atol=1e-5), err32

    # Default fast path: bf16 MXU operands, f32 accumulation.
    z16 = jax.block_until_ready(nonlocal_block_egaussian(x, params))
    assert z16.shape == x.shape and z16.dtype == x.dtype
    err16 = float(jnp.max(jnp.abs(z16 - z_ref)))
    assert jnp.allclose(z16, z_ref, rtol=5e-2, atol=5e-2), err16

    print("KERNEL_OK")
</pallas_src>

<mosaic_0001>
module attributes {stable_mosaic.version = 11 : i64} {
  func.func @_gphi_pool_kernel(%arg0: i32, %arg1: i32, %arg2: memref<1x4x256xf32, #tpu.memory_space<vmem>>, %arg3: memref<4x4xf32, #tpu.memory_space<vmem>>, %arg4: memref<4x1xf32, #tpu.memory_space<vmem>>, %arg5: memref<16x8xf32, #tpu.memory_space<vmem>>, %arg6: memref<16x8xf32, #tpu.memory_space<vmem>>, %arg7: memref<1x64x2xf32, #tpu.memory_space<vmem>>, %arg8: memref<1x2x64xf32, #tpu.memory_space<vmem>>) attributes {dimension_semantics = [#tpu.dimension_semantics<parallel>, #tpu.dimension_semantics<parallel>], iteration_bounds = array<i64: 2, 1>, scalar_prefetch = 0 : i64, scratch_operands = 0 : i64, tpu.core_type = #tpu.core_type<tc>, window_params = [{transform_indices = @transform_0, window_bounds = array<i64: 1, 4, 256>}, {pipeline_mode = #tpu.pipeline_mode<synchronous>, transform_indices = @transform_1, window_bounds = array<i64: 4, 4>}, {pipeline_mode = #tpu.pipeline_mode<synchronous>, transform_indices = @transform_2, window_bounds = array<i64: 4, 1>}, {pipeline_mode = #tpu.pipeline_mode<synchronous>, transform_indices = @transform_3, window_bounds = array<i64: 16, 8>}, {pipeline_mode = #tpu.pipeline_mode<synchronous>, transform_indices = @transform_4, window_bounds = array<i64: 16, 8>}, {transform_indices = @transform_5, window_bounds = array<i64: 1, 64, 2>}, {transform_indices = @transform_6, window_bounds = array<i64: 1, 2, 64>}]} {
    %c0 = arith.constant 0 : index
    %c0_0 = arith.constant 0 : index
    %c0_1 = arith.constant 0 : index
    %0 = vector.load %arg2[%c0, %c0_0, %c0_1] : memref<1x4x256xf32, #tpu.memory_space<vmem>>, vector<1x4x256xf32>
    %1 = vector.shape_cast %0 : vector<1x4x256xf32> to vector<4x256xf32>
    %c0_2 = arith.constant 0 : index
    %c0_3 = arith.constant 0 : index
    %2 = vector.load %arg3[%c0_2, %c0_3] : memref<4x4xf32, #tpu.memory_space<vmem>>, vector<4x4xf32>
    %cst = arith.constant dense<0.000000e+00> : vector<4x256xf32>
    %3 = tpu.matmul %2, %1, %cst {dimension_numbers = #tpu.dot_dimension_numbers<[1], [0], [0], [1], [0, 0, 1, 1], [], []>} : vector<4x4xf32>, vector<4x256xf32>, vector<4x256xf32> -> vector<4x256xf32>
    %c0_4 = arith.constant 0 : index
    %c0_5 = arith.constant 0 : index
    %4 = vector.load %arg4[%c0_4, %c0_5] : memref<4x1xf32, #tpu.memory_space<vmem>>, vector<4x1xf32>
    %5 = vector.broadcast %4 : vector<4x1xf32> to vector<4x256xf32>
    %6 = arith.addf %3, %5 : vector<4x256xf32>
    %c0_6 = arith.constant 0 : index
    %c0_7 = arith.constant 0 : index
    %7 = vector.load %arg5[%c0_6, %c0_7] : memref<16x8xf32, #tpu.memory_space<vmem>>, vector<16x8xf32>
    %c0_8 = arith.constant 0 : index
    %c0_9 = arith.constant 0 : index
    %8 = vector.load %arg6[%c0_8, %c0_9] : memref<16x8xf32, #tpu.memory_space<vmem>>, vector<16x8xf32>
    %9 = vector.extract_strided_slice %6 {offsets = [0, 0], sizes = [4, 16], strides = [1, 1]} : vector<4x256xf32> to vector<4x16xf32>
    %10 = vector.extract_strided_slice %6 {offsets = [0, 16], sizes = [4, 16], strides = [1, 1]} : vector<4x256xf32> to vector<4x16xf32>
    %11 = arith.maximumf %9, %10 : vector<4x16xf32>
    %cst_10 = arith.constant dense<0.000000e+00> : vector<4x8xf32>
    %12 = tpu.matmul %11, %7, %cst_10 {dimension_numbers = #tpu.dot_dimension_numbers<[1], [0], [0], [1], [0, 0, 1, 1], [], []>} : vector<4x16xf32>, vector<16x8xf32>, vector<4x8xf32> -> vector<4x8xf32>
    %cst_11 = arith.constant dense<0.000000e+00> : vector<4x8xf32>
    %13 = tpu.matmul %11, %8, %cst_11 {dimension_numbers = #tpu.dot_dimension_numbers<[1], [0], [0], [1], [0, 0, 1, 1], [], []>} : vector<4x16xf32>, vector<16x8xf32>, vector<4x8xf32> -> vector<4x8xf32>
    %14 = arith.maximumf %12, %13 : vector<4x8xf32>
    %15 = vector.extract_strided_slice %14 {offsets = [0, 0], sizes = [2, 8], strides = [1, 1]} : vector<4x8xf32> to vector<2x8xf32>
    %16 = tpu.transpose %15, [1, 0] : vector<2x8xf32> -> vector<8x2xf32>
    %c0_12 = arith.constant 0 : index
    %c0_13 = arith.constant 0 : index
    %c0_14 = arith.constant 0 : index
    %17 = vector.load %arg7[%c0_12, %c0_13, %c0_14] : memref<1x64x2xf32, #tpu.memory_space<vmem>>, vector<1x8x2xf32>
    %18 = vector.shape_cast %17 : vector<1x8x2xf32> to vector<8x2xf32>
    %19 = vector.shape_cast %16 : vector<8x2xf32> to vector<1x8x2xf32>
    tpu.vector_store %arg7[%c0_12, %c0_13, %c0_14], %19 {strides = array<i32>} : memref<1x64x2xf32, #tpu.memory_space<vmem>>, vector<1x8x2xf32>,
    %20 = vector.extract_strided_slice %14 {offsets = [2, 0], sizes = [2, 8], strides = [1, 1]} : vector<4x8xf32> to vector<2x8xf32>
    %c0_15 = arith.constant 0 : index
    %c0_16 = arith.constant 0 : index
    %c0_17 = arith.constant 0 : index
    %21 = vector.load %arg8[%c0_15, %c0_16, %c0_17] : memref<1x2x64xf32, #tpu.memory_space<vmem>>, vector<1x2x8xf32>
    %22 = vector.shape_cast %21 : vector<1x2x8xf32> to vector<2x8xf32>
    %23 = vector.shape_cast %20 : vector<2x8xf32> to vector<1x2x8xf32>
    tpu.vector_store %arg8[%c0_15, %c0_16, %c0_17], %23 {strides = array<i32>} : memref<1x2x64xf32, #tpu.memory_space<vmem>>, vector<1x2x8xf32>,
    %24 = vector.extract_strided_slice %6 {offsets = [0, 32], sizes = [4, 16], strides = [1, 1]} : vector<4x256xf32> to vector<4x16xf32>
    %25 = vector.extract_strided_slice %6 {offsets = [0, 48], sizes = [4, 16], strides = [1, 1]} : vector<4x256xf32> to vector<4x16xf32>
    %26 = arith.maximumf %24, %25 : vector<4x16xf32>
    %cst_18 = arith.constant dense<0.000000e+00> : vector<4x8xf32>
    %27 = tpu.matmul %26, %7, %cst_18 {dimension_numbers = #tpu.dot_dimension_numbers<[1], [0], [0], [1], [0, 0, 1, 1], [], []>} : vector<4x16xf32>, vector<16x8xf32>, vector<4x8xf32> -> vector<4x8xf32>
    %cst_19 = arith.constant dense<0.000000e+00> : vector<4x8xf32>
    %28 = tpu.matmul %26, %8, %cst_19 {dimension_numbers = #tpu.dot_dimension_numbers<[1], [0], [0], [1], [0, 0, 1, 1], [], []>} : vector<4x16xf32>, vector<16x8xf32>, vector<4x8xf32> -> vector<4x8xf32>
    %29 = arith.maximumf %27, %28 : vector<4x8xf32>
    %30 = vector.extract_strided_slice %29 {offsets = [0, 0], sizes = [2, 8], strides = [1, 1]} : vector<4x8xf32> to vector<2x8xf32>
    %31 = tpu.transpose %30, [1, 0] : vector<2x8xf32> -> vector<8x2xf32>
    %c0_20 = arith.constant 0 : index
    %c8 = arith.constant 8 : index
    %c0_21 = arith.constant 0 : index
    %32 = vector.load %arg7[%c0_20, %c8, %c0_21] : memref<1x64x2xf32, #tpu.memory_space<vmem>>, vector<1x8x2xf32>
    %33 = vector.shape_cast %32 : vector<1x8x2xf32> to vector<8x2xf32>
    %34 = vector.shape_cast %31 : vector<8x2xf32> to vector<1x8x2xf32>
    tpu.vector_store %arg7[%c0_20, %c8, %c0_21], %34 {strides = array<i32>} : memref<1x64x2xf32, #tpu.memory_space<vmem>>, vector<1x8x2xf32>,
    %35 = vector.extract_strided_slice %29 {offsets = [2, 0], sizes = [2, 8], strides = [1, 1]} : vector<4x8xf32> to vector<2x8xf32>
    %c0_22 = arith.constant 0 : index
    %c0_23 = arith.constant 0 : index
    %c8_24 = arith.constant 8 : index
    %36 = vector.load %arg8[%c0_22, %c0_23, %c8_24] : memref<1x2x64xf32, #tpu.memory_space<vmem>>, vector<1x2x8xf32>
    %37 = vector.shape_cast %36 : vector<1x2x8xf32> to vector<2x8xf32>
    %38 = vector.shape_cast %35 : vector<2x8xf32> to vector<1x2x8xf32>
    tpu.vector_store %arg8[%c0_22, %c0_23, %c8_24], %38 {strides = array<i32>} : memref<1x2x64xf32, #tpu.memory_space<vmem>>, vector<1x2x8xf32>,
    %39 = vector.extract_strided_slice %6 {offsets = [0, 64], sizes = [4, 16], strides = [1, 1]} : vector<4x256xf32> to vector<4x16xf32>
    %40 = vector.extract_strided_slice %6 {offsets = [0, 80], sizes = [4, 16], strides = [1, 1]} : vector<4x256xf32> to vector<4x16xf32>
    %41 = arith.maximumf %39, %40 : vector<4x16xf32>
    %cst_25 = arith.constant dense<0.000000e+00> : vector<4x8xf32>
    %42 = tpu.matmul %41, %7, %cst_25 {dimension_numbers = #tpu.dot_dimension_numbers<[1], [0], [0], [1], [0, 0, 1, 1], [], []>} : vector<4x16xf32>, vector<16x8xf32>, vector<4x8xf32> -> vector<4x8xf32>
    %cst_26 = arith.constant dense<0.000000e+00> : vector<4x8xf32>
    %43 = tpu.matmul %41, %8, %cst_26 {dimension_numbers = #tpu.dot_dimension_numbers<[1], [0], [0], [1], [0, 0, 1, 1], [], []>} : vector<4x16xf32>, vector<16x8xf32>, vector<4x8xf32> -> vector<4x8xf32>
    %44 = arith.maximumf %42, %43 : vector<4x8xf32>
    %45 = vector.extract_strided_slice %44 {offsets = [0, 0], sizes = [2, 8], strides = [1, 1]} : vector<4x8xf32> to vector<2x8xf32>
    %46 = tpu.transpose %45, [1, 0] : vector<2x8xf32> -> vector<8x2xf32>
    %c0_27 = arith.constant 0 : index
    %c16 = arith.constant 16 : index
    %c0_28 = arith.constant 0 : index
    %47 = vector.load %arg7[%c0_27, %c16, %c0_28] : memref<1x64x2xf32, #tpu.memory_space<vmem>>, vector<1x8x2xf32>
    %48 = vector.shape_cast %47 : vector<1x8x2xf32> to vector<8x2xf32>
    %49 = vector.shape_cast %46 : vector<8x2xf32> to vector<1x8x2xf32>
    tpu.vector_store %arg7[%c0_27, %c16, %c0_28], %49 {strides = array<i32>} : memref<1x64x2xf32, #tpu.memory_space<vmem>>, vector<1x8x2xf32>,
    %50 = vector.extract_strided_slice %44 {offsets = [2, 0], sizes = [2, 8], strides = [1, 1]} : vector<4x8xf32> to vector<2x8xf32>
    %c0_29 = arith.constant 0 : index
    %c0_30 = arith.constant 0 : index
    %c16_31 = arith.constant 16 : index
    %51 = vector.load %arg8[%c0_29, %c0_30, %c16_31] : memref<1x2x64xf32, #tpu.memory_space<vmem>>, vector<1x2x8xf32>
    %52 = vector.shape_cast %51 : vector<1x2x8xf32> to vector<2x8xf32>
    %53 = vector.shape_cast %50 : vector<2x8xf32> to vector<1x2x8xf32>
    tpu.vector_store %arg8[%c0_29, %c0_30, %c16_31], %53 {strides = array<i32>} : memref<1x2x64xf32, #tpu.memory_space<vmem>>, vector<1x2x8xf32>,
    %54 = vector.extract_strided_slice %6 {offsets = [0, 96], sizes = [4, 16], strides = [1, 1]} : vector<4x256xf32> to vector<4x16xf32>
    %55 = vector.extract_strided_slice %6 {offsets = [0, 112], sizes = [4, 16], strides = [1, 1]} : vector<4x256xf32> to vector<4x16xf32>
    %56 = arith.maximumf %54, %55 : vector<4x16xf32>
    %cst_32 = arith.constant dense<0.000000e+00> : vector<4x8xf32>
    %57 = tpu.matmul %56, %7, %cst_32 {dimension_numbers = #tpu.dot_dimension_numbers<[1], [0], [0], [1], [0, 0, 1, 1], [], []>} : vector<4x16xf32>, vector<16x8xf32>, vector<4x8xf32> -> vector<4x8xf32>
    %cst_33 = arith.constant dense<0.000000e+00> : vector<4x8xf32>
    %58 = tpu.matmul %56, %8, %cst_33 {dimension_numbers = #tpu.dot_dimension_numbers<[1], [0], [0], [1], [0, 0, 1, 1], [], []>} : vector<4x16xf32>, vector<16x8xf32>, vector<4x8xf32> -> vector<4x8xf32>
    %59 = arith.maximumf %57, %58 : vector<4x8xf32>
    %60 = vector.extract_strided_slice %59 {offsets = [0, 0], sizes = [2, 8], strides = [1, 1]} : vector<4x8xf32> to vector<2x8xf32>
    %61 = tpu.transpose %60, [1, 0] : vector<2x8xf32> -> vector<8x2xf32>
    %c0_34 = arith.constant 0 : index
    %c24 = arith.constant 24 : index
    %c0_35 = arith.constant 0 : index
    %62 = vector.load %arg7[%c0_34, %c24, %c0_35] : memref<1x64x2xf32, #tpu.memory_space<vmem>>, vector<1x8x2xf32>
    %63 = vector.shape_cast %62 : vector<1x8x2xf32> to vector<8x2xf32>
    %64 = vector.shape_cast %61 : vector<8x2xf32> to vector<1x8x2xf32>
    tpu.vector_store %arg7[%c0_34, %c24, %c0_35], %64 {strides = array<i32>} : memref<1x64x2xf32, #tpu.memory_space<vmem>>, vector<1x8x2xf32>,
    %65 = vector.extract_strided_slice %59 {offsets = [2, 0], sizes = [2, 8], strides = [1, 1]} : vector<4x8xf32> to vector<2x8xf32>
    %c0_36 = arith.constant 0 : index
    %c0_37 = arith.constant 0 : index
    %c24_38 = arith.constant 24 : index
    %66 = vector.load %arg8[%c0_36, %c0_37, %c24_38] : memref<1x2x64xf32, #tpu.memory_space<vmem>>, vector<1x2x8xf32>
    %67 = vector.shape_cast %66 : vector<1x2x8xf32> to vector<2x8xf32>
    %68 = vector.shape_cast %65 : vector<2x8xf32> to vector<1x2x8xf32>
    tpu.vector_store %arg8[%c0_36, %c0_37, %c24_38], %68 {strides = array<i32>} : memref<1x2x64xf32, #tpu.memory_space<vmem>>, vector<1x2x8xf32>,
    %69 = vector.extract_strided_slice %6 {offsets = [0, 128], sizes = [4, 16], strides = [1, 1]} : vector<4x256xf32> to vector<4x16xf32>
    %70 = vector.extract_strided_slice %6 {offsets = [0, 144], sizes = [4, 16], strides = [1, 1]} : vector<4x256xf32> to vector<4x16xf32>
    %71 = arith.maximumf %69, %70 : vector<4x16xf32>
    %cst_39 = arith.constant dense<0.000000e+00> : vector<4x8xf32>
    %72 = tpu.matmul %71, %7, %cst_39 {dimension_numbers = #tpu.dot_dimension_numbers<[1], [0], [0], [1], [0, 0, 1, 1], [], []>} : vector<4x16xf32>, vector<16x8xf32>, vector<4x8xf32> -> vector<4x8xf32>
    %cst_40 = arith.constant dense<0.000000e+00> : vector<4x8xf32>
    %73 = tpu.matmul %71, %8, %cst_40 {dimension_numbers = #tpu.dot_dimension_numbers<[1], [0], [0], [1], [0, 0, 1, 1], [], []>} : vector<4x16xf32>, vector<16x8xf32>, vector<4x8xf32> -> vector<4x8xf32>
    %74 = arith.maximumf %72, %73 : vector<4x8xf32>
    %75 = vector.extract_strided_slice %74 {offsets = [0, 0], sizes = [2, 8], strides = [1, 1]} : vector<4x8xf32> to vector<2x8xf32>
    %76 = tpu.transpose %75, [1, 0] : vector<2x8xf32> -> vector<8x2xf32>
    %c0_41 = arith.constant 0 : index
    %c32 = arith.constant 32 : index
    %c0_42 = arith.constant 0 : index
    %77 = vector.load %arg7[%c0_41, %c32, %c0_42] : memref<1x64x2xf32, #tpu.memory_space<vmem>>, vector<1x8x2xf32>
    %78 = vector.shape_cast %77 : vector<1x8x2xf32> to vector<8x2xf32>
    %79 = vector.shape_cast %76 : vector<8x2xf32> to vector<1x8x2xf32>
    tpu.vector_store %arg7[%c0_41, %c32, %c0_42], %79 {strides = array<i32>} : memref<1x64x2xf32, #tpu.memory_space<vmem>>, vector<1x8x2xf32>,
    %80 = vector.extract_strided_slice %74 {offsets = [2, 0], sizes = [2, 8], strides = [1, 1]} : vector<4x8xf32> to vector<2x8xf32>
    %c0_43 = arith.constant 0 : index
    %c0_44 = arith.constant 0 : index
    %c32_45 = arith.constant 32 : index
    %81 = vector.load %arg8[%c0_43, %c0_44, %c32_45] : memref<1x2x64xf32, #tpu.memory_space<vmem>>, vector<1x2x8xf32>
    %82 = vector.shape_cast %81 : vector<1x2x8xf32> to vector<2x8xf32>
    %83 = vector.shape_cast %80 : vector<2x8xf32> to vector<1x2x8xf32>
    tpu.vector_store %arg8[%c0_43, %c0_44, %c32_45], %83 {strides = array<i32>} : memref<1x2x64xf32, #tpu.memory_space<vmem>>, vector<1x2x8xf32>,
    %84 = vector.extract_strided_slice %6 {offsets = [0, 160], sizes = [4, 16], strides = [1, 1]} : vector<4x256xf32> to vector<4x16xf32>
    %85 = vector.extract_strided_slice %6 {offsets = [0, 176], sizes = [4, 16], strides = [1, 1]} : vector<4x256xf32> to vector<4x16xf32>
    %86 = arith.maximumf %84, %85 : vector<4x16xf32>
    %cst_46 = arith.constant dense<0.000000e+00> : vector<4x8xf32>
    %87 = tpu.matmul %86, %7, %cst_46 {dimension_numbers = #tpu.dot_dimension_numbers<[1], [0], [0], [1], [0, 0, 1, 1], [], []>} : vector<4x16xf32>, vector<16x8xf32>, vector<4x8xf32> -> vector<4x8xf32>
    %cst_47 = arith.constant dense<0.000000e+00> : vector<4x8xf32>
    %88 = tpu.matmul %86, %8, %cst_47 {dimension_numbers = #tpu.dot_dimension_numbers<[1], [0], [0], [1], [0, 0, 1, 1], [], []>} : vector<4x16xf32>, vector<16x8xf32>, vector<4x8xf32> -> vector<4x8xf32>
    %89 = arith.maximumf %87, %88 : vector<4x8xf32>
    %90 = vector.extract_strided_slice %89 {offsets = [0, 0], sizes = [2, 8], strides = [1, 1]} : vector<4x8xf32> to vector<2x8xf32>
    %91 = tpu.transpose %90, [1, 0] : vector<2x8xf32> -> vector<8x2xf32>
    %c0_48 = arith.constant 0 : index
    %c40 = arith.constant 40 : index
    %c0_49 = arith.constant 0 : index
    %92 = vector.load %arg7[%c0_48, %c40, %c0_49] : memref<1x64x2xf32, #tpu.memory_space<vmem>>, vector<1x8x2xf32>
    %93 = vector.shape_cast %92 : vector<1x8x2xf32> to vector<8x2xf32>
    %94 = vector.shape_cast %91 : vector<8x2xf32> to vector<1x8x2xf32>
    tpu.vector_store %arg7[%c0_48, %c40, %c0_49], %94 {strides = array<i32>} : memref<1x64x2xf32, #tpu.memory_space<vmem>>, vector<1x8x2xf32>,
    %95 = vector.extract_strided_slice %89 {offsets = [2, 0], sizes = [2, 8], strides = [1, 1]} : vector<4x8xf32> to vector<2x8xf32>
    %c0_50 = arith.constant 0 : index
    %c0_51 = arith.constant 0 : index
    %c40_52 = arith.constant 40 : index
    %96 = vector.load %arg8[%c0_50, %c0_51, %c40_52] : memref<1x2x64xf32, #tpu.memory_space<vmem>>, vector<1x2x8xf32>
    %97 = vector.shape_cast %96 : vector<1x2x8xf32> to vector<2x8xf32>
    %98 = vector.shape_cast %95 : vector<2x8xf32> to vector<1x2x8xf32>
    tpu.vector_store %arg8[%c0_50, %c0_51, %c40_52], %98 {strides = array<i32>} : memref<1x2x64xf32, #tpu.memory_space<vmem>>, vector<1x2x8xf32>,
    %99 = vector.extract_strided_slice %6 {offsets = [0, 192], sizes = [4, 16], strides = [1, 1]} : vector<4x256xf32> to vector<4x16xf32>
    %100 = vector.extract_strided_slice %6 {offsets = [0, 208], sizes = [4, 16], strides = [1, 1]} : vector<4x256xf32> to vector<4x16xf32>
    %101 = arith.maximumf %99, %100 : vector<4x16xf32>
    %cst_53 = arith.constant dense<0.000000e+00> : vector<4x8xf32>
    %102 = tpu.matmul %101, %7, %cst_53 {dimension_numbers = #tpu.dot_dimension_numbers<[1], [0], [0], [1], [0, 0, 1, 1], [], []>} : vector<4x16xf32>, vector<16x8xf32>, vector<4x8xf32> -> vector<4x8xf32>
    %cst_54 = arith.constant dense<0.000000e+00> : vector<4x8xf32>
    %103 = tpu.matmul %101, %8, %cst_54 {dimension_numbers = #tpu.dot_dimension_numbers<[1], [0], [0], [1], [0, 0, 1, 1], [], []>} : vector<4x16xf32>, vector<16x8xf32>, vector<4x8xf32> -> vector<4x8xf32>
    %104 = arith.maximumf %102, %103 : vector<4x8xf32>
    %105 = vector.extract_strided_slice %104 {offsets = [0, 0], sizes = [2, 8], strides = [1, 1]} : vector<4x8xf32> to vector<2x8xf32>
    %106 = tpu.transpose %105, [1, 0] : vector<2x8xf32> -> vector<8x2xf32>
    %c0_55 = arith.constant 0 : index
    %c48 = arith.constant 48 : index
    %c0_56 = arith.constant 0 : index
    %107 = vector.load %arg7[%c0_55, %c48, %c0_56] : memref<1x64x2xf32, #tpu.memory_space<vmem>>, vector<1x8x2xf32>
    %108 = vector.shape_cast %107 : vector<1x8x2xf32> to vector<8x2xf32>
    %109 = vector.shape_cast %106 : vector<8x2xf32> to vector<1x8x2xf32>
    tpu.vector_store %arg7[%c0_55, %c48, %c0_56], %109 {strides = array<i32>} : memref<1x64x2xf32, #tpu.memory_space<vmem>>, vector<1x8x2xf32>,
    %110 = vector.extract_strided_slice %104 {offsets = [2, 0], sizes = [2, 8], strides = [1, 1]} : vector<4x8xf32> to vector<2x8xf32>
    %c0_57 = arith.constant 0 : index
    %c0_58 = arith.constant 0 : index
    %c48_59 = arith.constant 48 : index
    %111 = vector.load %arg8[%c0_57, %c0_58, %c48_59] : memref<1x2x64xf32, #tpu.memory_space<vmem>>, vector<1x2x8xf32>
    %112 = vector.shape_cast %111 : vector<1x2x8xf32> to vector<2x8xf32>
    %113 = vector.shape_cast %110 : vector<2x8xf32> to vector<1x2x8xf32>
    tpu.vector_store %arg8[%c0_57, %c0_58, %c48_59], %113 {strides = array<i32>} : memref<1x2x64xf32, #tpu.memory_space<vmem>>, vector<1x2x8xf32>,
    %114 = vector.extract_strided_slice %6 {offsets = [0, 224], sizes = [4, 16], strides = [1, 1]} : vector<4x256xf32> to vector<4x16xf32>
    %115 = vector.extract_strided_slice %6 {offsets = [0, 240], sizes = [4, 16], strides = [1, 1]} : vector<4x256xf32> to vector<4x16xf32>
    %116 = arith.maximumf %114, %115 : vector<4x16xf32>
    %cst_60 = arith.constant dense<0.000000e+00> : vector<4x8xf32>
    %117 = tpu.matmul %116, %7, %cst_60 {dimension_numbers = #tpu.dot_dimension_numbers<[1], [0], [0], [1], [0, 0, 1, 1], [], []>} : vector<4x16xf32>, vector<16x8xf32>, vector<4x8xf32> -> vector<4x8xf32>
    %cst_61 = arith.constant dense<0.000000e+00> : vector<4x8xf32>
    %118 = tpu.matmul %116, %8, %cst_61 {dimension_numbers = #tpu.dot_dimension_numbers<[1], [0], [0], [1], [0, 0, 1, 1], [], []>} : vector<4x16xf32>, vector<16x8xf32>, vector<4x8xf32> -> vector<4x8xf32>
    %119 = arith.maximumf %117, %118 : vector<4x8xf32>
    %120 = vector.extract_strided_slice %119 {offsets = [0, 0], sizes = [2, 8], strides = [1, 1]} : vector<4x8xf32> to vector<2x8xf32>
    %121 = tpu.transpose %120, [1, 0] : vector<2x8xf32> -> vector<8x2xf32>
    %c0_62 = arith.constant 0 : index
    %c56 = arith.constant 56 : index
    %c0_63 = arith.constant 0 : index
    %122 = vector.load %arg7[%c0_62, %c56, %c0_63] : memref<1x64x2xf32, #tpu.memory_space<vmem>>, vector<1x8x2xf32>
    %123 = vector.shape_cast %122 : vector<1x8x2xf32> to vector<8x2xf32>
    %124 = vector.shape_cast %121 : vector<8x2xf32> to vector<1x8x2xf32>
    tpu.vector_store %arg7[%c0_62, %c56, %c0_63], %124 {strides = array<i32>} : memref<1x64x2xf32, #tpu.memory_space<vmem>>, vector<1x8x2xf32>,
    %125 = vector.extract_strided_slice %119 {offsets = [2, 0], sizes = [2, 8], strides = [1, 1]} : vector<4x8xf32> to vector<2x8xf32>
    %c0_64 = arith.constant 0 : index
    %c0_65 = arith.constant 0 : index
    %c56_66 = arith.constant 56 : index
    %126 = vector.load %arg8[%c0_64, %c0_65, %c56_66] : memref<1x2x64xf32, #tpu.memory_space<vmem>>, vector<1x2x8xf32>
    %127 = vector.shape_cast %126 : vector<1x2x8xf32> to vector<2x8xf32>
    %128 = vector.shape_cast %125 : vector<2x8xf32> to vector<1x2x8xf32>
    tpu.vector_store %arg8[%c0_64, %c0_65, %c56_66], %128 {strides = array<i32>} : memref<1x2x64xf32, #tpu.memory_space<vmem>>, vector<1x2x8xf32>,
    return
  }
  func.func @transform_0(%arg0: i32, %arg1: i32) -> (i32, i32, i32) {
    %c0_i32 = arith.constant 0 : i32
    %c0_i32_0 = arith.constant 0 : i32
    return %arg0, %c0_i32, %arg1 : i32, i32, i32
  }
  func.func @transform_1(%arg0: i32, %arg1: i32) -> (i32, i32) {
    %c0_i32 = arith.constant 0 : i32
    %c0_i32_0 = arith.constant 0 : i32
    %c0_i32_1 = arith.constant 0 : i32
    return %c0_i32, %c0_i32_0 : i32, i32
  }
  func.func @transform_2(%arg0: i32, %arg1: i32) -> (i32, i32) {
    %c0_i32 = arith.constant 0 : i32
    %c0_i32_0 = arith.constant 0 : i32
    %c0_i32_1 = arith.constant 0 : i32
    return %c0_i32, %c0_i32_0 : i32, i32
  }
  func.func @transform_3(%arg0: i32, %arg1: i32) -> (i32, i32) {
    %c0_i32 = arith.constant 0 : i32
    %c0_i32_0 = arith.constant 0 : i32
    %c0_i32_1 = arith.constant 0 : i32
    return %c0_i32, %c0_i32_0 : i32, i32
  }
  func.func @transform_4(%arg0: i32, %arg1: i32) -> (i32, i32) {
    %c0_i32 = arith.constant 0 : i32
    %c0_i32_0 = arith.constant 0 : i32
    %c0_i32_1 = arith.constant 0 : i32
    return %c0_i32, %c0_i32_0 : i32, i32
  }
  func.func @transform_5(%arg0: i32, %arg1: i32) -> (i32, i32, i32) {
    %c0_i32 = arith.constant 0 : i32
    %c0_i32_0 = arith.constant 0 : i32
    return %arg0, %arg1, %c0_i32 : i32, i32, i32
  }
  func.func @transform_6(%arg0: i32, %arg1: i32) -> (i32, i32, i32) {
    %c0_i32 = arith.constant 0 : i32
    %c0_i32_0 = arith.constant 0 : i32
    return %arg0, %c0_i32, %arg1 : i32, i32, i32
  }
}

</mosaic_0001>

<bundles_post_ra>
// kernel: tpu_custom_call.1
= control target key start
LH: loop header
LB: loop body
LE: loop exit
PB: predicated region body
PF: predicated region fallthrough
CT: control target
= control target key end

     0   :  { %12 = vsyncpa [#allocation3], 0  ;;  %s1592_s0 = inlined_call_operand.vmem [shape: f32[2,4,256], index: 0, kind: input, shape index: {}]   ;;  %s1593_s1 = inlined_call_operand.vmem [shape: f32[4,4], index: 1, kind: input, shape index: {}]   ;;  %s1594_s2 = inlined_call_operand.vmem [shape: f32[4,1], index: 2, kind: input, shape index: {}]   ;;  %s1595_s3 = inlined_call_operand.vmem [shape: f32[16,8], index: 3, kind: input, shape index: {}]   ;;  %s1596_s4 = inlined_call_operand.vmem [shape: f32[16,8], index: 4, kind: input, shape index: {}]   ;;  %s1597_s5 = inlined_call_operand.vmem [shape: f32[2,64,2], index: 5, kind: output, shape index: {0}]   ;;  %s1598_s6 = inlined_call_operand.hbm [shape: f32[2,2,64], index: 6, kind: output, shape index: {1}]  }
   0x1   :  { %14 = vsyncpa [#allocation3 + $0x1], 0  ;;  %s1418_s21 = smov 0   ;;  %s1420_s22 = smov 0  }
   0x2   :  { %s1422_s23 = smov 0   ;;  %s1424_s24 = smov 0  }
   0x3   :  { %s1426_s25 = smov 0   ;;  %s1428_s26 = smov 0  }
   0x4 LB: > { %s1188_s27 = sadd.s32 4294967295, %s1370_s26   ;;  %s1189_s28 = sadd.s32 4294967294, %s1370_s26   ;;  %s1370_s26 = sphi %s1428_s26, %s20_s26   ;;  %s1366_s25 = sphi %s1426_s25, %s1605_s25   ;;  %s1362_s24 = sphi %s1424_s24, %s1604_s24   ;;  %s1358_s23 = sphi %s1422_s23, %s1603_s23   ;;  %s1354_s22 = sphi %s1420_s22, %s1602_s22   ;;  %s1350_s21 = sphi %s1418_s21, %s1601_s21  }
   0x5   : > { %s32_s29 = sadd.s32 1, %s1366_s25  ;;  %s181_s30 = sadd.s32 1, %s1358_s23 }
   0x6   : > { %p34_p0 = scmp.ge.s32.totalorder %s32_s29, 2  ;;  %p191_p1 = scmp.ne.s32.totalorder %s1358_s23, %s1354_s22 }
   0x7   : > { %p192_p2 = scmp.eq.s32.totalorder %s1188_s27, 1  ;;  %p197_p3 = scmp.ne.s32.totalorder %s1354_s22, %s1350_s21 }
   0x8   : > { %s1607_s29 = smov (%p34_p0, %s32_s29), 0  ;;  %p198_p5 = scmp.eq.s32.totalorder %s1189_s28, 1 }
   0x9   : > { %p1458_p4 = por %p192_p2, %p191_p1  ;;  %s176_s8 = ssub.s32 %s1366_s25, %s1607_s29 }
   0xa   : > { %p1192_p6 = scmp.ge.s32.totalorder %s1370_s26, 1  ;;  %p179_p7 = scmp.eq.s32.totalorder %s176_s8, 0 }
   0xb   : > { %p1465_p8 = por %p198_p5, %p197_p3  ;;  %p241_p9 = scmp.lt.s32.totalorder %s1370_s26, 3 }
   0xc   : > { %s1471_s10 = scalar_select %p179_p7, %s1358_s23, %s181_s30  }
   0xd   : > { %p242_p10 = pnand %p1192_p6, %p241_p9 }
   0xe   : > { %p285_p11 = scmp.lt.s32.totalorder (!%p242_p10), %s1362_s24, 1  ;;  %s1373_s20 = smov (!%p242_p10), 112  }
   0xf   : > { %245 = sbr.rel (%p242_p10) target bundleno = 910 (0x38e), region = 40  ;;  %s1374_s16 = smov (!%p242_p10), 96  }
  0x10   : > { %s1376_s18 = smov (!%p242_p10), 32   ;;  %s281_s19 = sand.u32 (!%p242_p10), 1, %s1354_s22  }
  0x11   : > { %s1377_s28 = smov (!%p242_p10), 8   ;;  %s1378_s30 = smov (!%p242_p10), 24  }
  0x12   : > { %s1379_s8 = smov (!%p242_p10), 16   ;;  %s1057_s12 = scalar_lea.sflag (!%p242_p10), [#allocation3], %s281_s19 }
  0x14   : > { %v1372_v0 = vmov 0   ;;  %v306_v1 = vld [vmem:[%s1594_s2] sm:$0xf]  ;;  %s1478_s13 = scalar_select %p285_p11, %s1362_s24, 1  ;;  %vm320_vm0 = vcmask 1043456   ;;  %vm316_vm1 = vcmask 31744  }
  0x15   : > { %1291 = vset.pattern.permute.xlu0 %v1372_v0  ;;  %v305_v3 = vld [vmem:[%s1593_s1] sm:$0xf]  ;;  %v366_v11 = vld [vmem:[%s1595_s3 + $0x8] sm:$0xff]  ;;  %vm374_vm2 = vcmask 130048   ;;  %vm453_vm3 = vcmask 60418   ;;  %vm451_vm4 = vcmask 15360  }
  0x16   : > { %309 = vperm.xlu0 %1291, %v306_v1   ;;  %s1222_s14 = sshll.u32 %s1478_s13, 3  ;;  %v368_v12 = vld [vmem:[%s1596_s4 + $0x8] sm:$0xff]  ;;  %392 = vmatpush.msra.mxu2 %v366_v11  ;;  %v365_v13 = vld [vmem:[%s1595_s3] sm:$0xff]  ;;  %s1223_s11 = sshll.u32 %s1478_s13, 6  ;;  %vm537_vm5 = vcmask 126018   ;;  %vm621_vm6 = vcmask 191618  }
  0x17   : > { %s292_s17 = scalar_lea.vmem %s1592_s0, %s1222_s14  ;;  %412 = vmatpush.msra.mxu3 %v368_v12  ;;  %v367_v14 = vld [vmem:[%s1596_s4] sm:$0xff]  ;;  %s1528_s15 = scalar_lea.vmem %s1597_s5, %s1223_s11  ;;  %vm705_vm7 = vcmask 257218   ;;  %vm793_vm8 = vcmask 322818   ;;  %vm877_vm9 = vcmask 388418   ;;  %vm961_vm10 = vcmask 454018  }
  0x18   : > { %v304_v2 = vld [vmem:[%s292_s17] sm:$0xff]  ;;  %393 = vmatpush.msra.mxu2 %v365_v13  ;;  %s1375_s17 = smov 64   ;;  %s1380_s13 = smov 40   ;;  %vm1045_vm11 = vcmask 519618  }
  0x19   : > { %313 = vst [vmem:[#allocation1] ss:$2 sm:$0xff] %v304_v2  ;;  %413 = vmatpush.msra.mxu3 %v367_v14 }
  0x1a   : > { %557 = vmatpush.msrb.mxu2 %v366_v11 }
  0x1b   : > { %577 = vmatpush.msrb.mxu3 %v368_v12 }
  0x1c   : > { %558 = vmatpush.msrb.mxu2 %v365_v13 }
  0x1d   : > { %578 = vmatpush.msrb.mxu3 %v367_v14 }
  0x20   : > { %v314_v4 = vld.sshfl [vmem:[#allocation1] sm:$0xff pattern:$0x75316420]  ;;  %v315_v5 = vld.sshfl [vmem:[#allocation1 + $0x8] sm:$0xff pattern:$0x75316420] }
  0x21   : > { %1198 = vmatpush.msk.msra.mxu0 %vm320_vm0, %v314_v4  ;;  %1200 = vmatpush.msk.msra.mxu1 %vm320_vm0, %v315_v5 }
  0x22   : > { %1199 = vmatmul.msk.f32.vlgmr.msra.gmra.mxu0 %vm316_vm1, %v305_v3  ;;  %1201 = vmatmul.msk.f32.vlgmr.msra.gmra.mxu1 %vm316_vm1, %v305_v3 }
  0x23   : > { %473 = vmatpush.msrb.mxu0 %v366_v11  ;;  %493 = vmatpush.msrb.mxu1 %v368_v12 }
  0x25   : > { %474 = vmatpush.msrb.mxu0 %v365_v13  ;;  %494 = vmatpush.msrb.mxu1 %v367_v14 }
  0x27   : > { %641 = vmatpush.msra.mxu0 %v366_v11  ;;  %661 = vmatpush.msra.mxu1 %v368_v12 }
  0x29   : > { %642 = vmatpush.msra.mxu0 %v365_v13  ;;  %662 = vmatpush.msra.mxu1 %v367_v14 }
  0x88   : > { %v310_v6 = vpop.permute.xlu0 %309 }
  0x9f   : > { %v342_v7 = vpop.f32.mrf.mxu0  ;;  %v362_v8 = vpop.f32.mrf.mxu1 }
  0xa0   : > { %v343_v9 = vadd.f32 %v342_v7, %v310_v6  ;;  %v363_v10 = vadd.f32 %v362_v8, %v310_v6 }
  0xa2   : > { %708 = vrot.lane.b32.xlu2 %v363_v10, %s1373_s20  ;;  %370 = vrot.lane.b32.xlu0 %v343_v9, %s1373_s20  ;;  %s1193_s20 = sshll.u32 %s281_s19, 1 }
  0xa3   : > { %s1518_s27 = scalar_lea.vmem [#allocation2], %s1193_s20 }
  0xfc   : > { %v709_v15 = vpop.permute.xlu2 %708 }
  0xfd   : > { %v711_v16 = vmax.f32 %v363_v10, %v709_v15 }
  0xff   : > { %795 = vrot.lane.b32.xlu2 %v711_v16, %s1374_s16 }
 0x107   : > { %879 = vrot.lane.b32.xlu2 %v711_v16, %s1375_s17 }
 0x10f   : > { %963 = vrot.lane.b32.xlu2 %v711_v16, %s1376_s18 }
 0x114   : > { %v371_v17 = vpop.permute.xlu0 %370 }
 0x115   : > { %v373_v18 = vmax.f32 %v343_v9, %v371_v17 }
 0x117   : > { %539 = vrot.lane.b32.xlu0 %v373_v18, %s1375_s17  ;;  %455 = vrot.lane.b32.xlu1 %v373_v18, %s1374_s16  ;;  %s1381_s16 = smov 56   ;;  %s1382_s17 = smov 48  }
 0x118   : > { %1202 = vmatmul.msk.f32.vlgmr.msra.gmra.mxu2 %vm374_vm2, %v373_v18  ;;  %1203 = vmatmul.msk.f32.vlgmr.msra.gmra.mxu3 %vm374_vm2, %v373_v18 }
 0x119   : > { %729 = vmatpush.msra.mxu2 %v366_v11  ;;  %749 = vmatpush.msra.mxu3 %v368_v12 }
 0x11b   : > { %730 = vmatpush.msra.mxu2 %v365_v13  ;;  %750 = vmatpush.msra.mxu3 %v367_v14 }
 0x11f   : > { %623 = vrot.lane.b32.xlu1 %v373_v18, %s1376_s18 }
 0x159   : > { %v796_v21 = vpop.permute.xlu2 %795 }
 0x161   : > { %v880_v23 = vpop.permute.xlu2 %879 }
 0x169   : > { %v964_v27 = vpop.permute.xlu2 %963 }
 0x189   : > { %v540_v19 = vpop.permute.xlu0 %539  ;;  %v456_v20 = vpop.permute.xlu1 %455 }
 0x18a   : > { %1204 = vmatmul.msk.f32.vlgmr.msrb.gmra.mxu0 %vm374_vm2, %v456_v20  ;;  %1205 = vmatmul.msk.f32.vlgmr.msrb.gmra.mxu1 %vm374_vm2, %v456_v20 }
 0x18b   : > { %1206 = vmatmul.msk.f32.vlgmr.msrb.gmra.mxu2 %vm374_vm2, %v540_v19  ;;  %1207 = vmatmul.msk.f32.vlgmr.msrb.gmra.mxu3 %vm374_vm2, %v540_v19 }
 0x18c   : > { %813 = vmatpush.msrb.mxu0 %v366_v11  ;;  %833 = vmatpush.msrb.mxu1 %v368_v12 }
 0x18d   : > { %897 = vmatpush.msrb.mxu2 %v366_v11  ;;  %917 = vmatpush.msrb.mxu3 %v368_v12 }
 0x18e   : > { %814 = vmatpush.msrb.mxu0 %v365_v13  ;;  %834 = vmatpush.msrb.mxu1 %v367_v14 }
 0x18f   : > { %898 = vmatpush.msrb.mxu2 %v365_v13  ;;  %918 = vmatpush.msrb.mxu3 %v367_v14 }
 0x191   : > { %v624_v22 = vpop.permute.xlu1 %623 }
 0x192   : > { %1208 = vmatmul.msk.f32.vlgmr.msra.gmra.mxu0 %vm374_vm2, %v624_v22  ;;  %1209 = vmatmul.msk.f32.vlgmr.msra.gmra.mxu1 %vm374_vm2, %v624_v22 }
 0x193   : > { %1210 = vmatmul.msk.f32.vlgmr.msra.gmra.mxu2 %vm374_vm2, %v711_v16  ;;  %1211 = vmatmul.msk.f32.vlgmr.msra.gmra.mxu3 %vm374_vm2, %v711_v16 }
 0x194   : > { %981 = vmatpush.msra.mxu0 %v366_v11  ;;  %1001 = vmatpush.msra.mxu1 %v368_v12 }
 0x196   : > { %982 = vmatpush.msra.mxu0 %v365_v13  ;;  %1002 = vmatpush.msra.mxu1 %v367_v14 }
 0x19a   : > { %1212 = vmatmul.msk.f32.vlgmr.msrb.gmra.mxu0 %vm374_vm2, %v796_v21  ;;  %1213 = vmatmul.msk.f32.vlgmr.msrb.gmra.mxu1 %vm374_vm2, %v796_v21 }
 0x19b   : > { %v395_v24 = vpop.f32.mrf.mxu2  ;;  %v415_v25 = vpop.f32.mrf.mxu3  ;;  %1214 = vmatmul.msk.f32.vlgmr.msrb.gmra.mxu2 %vm374_vm2, %v880_v23  ;;  %1215 = vmatmul.msk.f32.vlgmr.msrb.gmra.mxu3 %vm374_vm2, %v880_v23 }
 0x19c   : > { %v418_v26 = vmax.f32 %v395_v24, %v415_v25 }
 0x19e   : > { %419 = vxpose.xlu1.b32.start.end [1/1] (short) (narrow) %v418_v26, 8  ;;  %454 = vst.msk [vmem:[%s1518_s27 - $0x2] sm:$0xc] %vm453_vm3, %v418_v26 }
 0x1a2   : > { %1216 = vmatmul.msk.f32.vlgmr.msra.gmra.mxu0 %vm374_vm2, %v964_v27  ;;  %1217 = vmatmul.msk.f32.vlgmr.msra.gmra.mxu1 %vm374_vm2, %v964_v27 }
 0x207   : > { %v476_v28 = vpop.f32.mrf.mxu0  ;;  %v496_v29 = vpop.f32.mrf.mxu1 }
 0x208   : > { %v499_v30 = vmax.f32 %v476_v28, %v496_v29 }
 0x20a   : > { %500 = vxpose.xlu2.b32.start.end [1/1] (short) (narrow) %v499_v30, 8 }
 0x20e   : > { %v560_v31 = vpop.f32.mrf.mxu2  ;;  %v580_v32 = vpop.f32.mrf.mxu3 }
 0x20f   : > { %v583_v33 = vmax.f32 %v560_v31, %v580_v32  ;;  %v644_v34 = vpop.f32.mrf.mxu0  ;;  %v664_v35 = vpop.f32.mrf.mxu1 }
 0x210   : > { %v667_v36 = vmax.f32 %v644_v34, %v664_v35 }
 0x211   : > { %584 = vxpose.xlu0.b32.start.end [1/1] (short) (narrow) %v583_v33, 8 }
 0x212   : > { %668 = vxpose.xlu1.b32.start.end [1/1] (short) (narrow) %v667_v36, 8 }
 0x216   : > { %v732_v37 = vpop.f32.mrf.mxu2  ;;  %v752_v38 = vpop.f32.mrf.mxu3 }
 0x217   : > { %v755_v39 = vmax.f32 %v732_v37, %v752_v38  ;;  %v816_v40 = vpop.f32.mrf.mxu0  ;;  %v836_v41 = vpop.f32.mrf.mxu1 }
 0x218   : > { %v839_v44 = vmax.f32 %v816_v40, %v836_v41 }
 0x21e   : > { %v900_v47 = vpop.f32.mrf.mxu2  ;;  %v920_v48 = vpop.f32.mrf.mxu3 }
 0x21f   : > { %v984_v42 = vpop.f32.mrf.mxu0  ;;  %v1004_v43 = vpop.f32.mrf.mxu1  ;;  %v923_v49 = vmax.f32 %v900_v47, %v920_v48 }
 0x220   : > { %v1007_v45 = vmax.f32 %v984_v42, %v1004_v43 }
 0x242   : > { %v435_v50 = vpop.trf.xlu1 }
 0x243   : > { %452 = vst.msk [vmem:[%s1528_s15] sm:$0xff] %vm451_vm4, %v435_v50 }
 0x26c   : > { %790 = vrot.lane.b32.xlu1 %v755_v39, %s1376_s18  ;;  %s1219_s18 = sshll.u32 %s1362_s24, 1 }
 0x273   : > { %534 = vrot.lane.b32.xlu2 %v499_v30, %s1377_s28 }
 0x27b   : > { %702 = vrot.lane.b32.xlu2 %v667_v36, %s1378_s30  ;;  %s1072_s30 = scalar_lea.hbm %s1598_s6, %s1219_s18 }
 0x27c   : > { %s1076_s11 = sshll.u32 %s1072_s30, 4  ;;  %s1077_s11 = int_to_ptr.hbm [resolvable:$true] %s1076_s11 }
 0x27d   : > { %s1306_s14 = sshra.s32 %s1077_s11, 4  ;;  %s1307_s14 = int_to_ptr.hbm [resolvable:$true] %s1306_s14 }
 0x27e   : > { %s1308_s24 = scalar_lea.hbm %s1307_s14, 2  ;;  %p1313_p1 = scmp.lt.s32.totalorder %s1307_s14, %s1598_s6 }
 0x27f   : > { %618 = vrot.lane.b32.xlu0 %v583_v33, %s1379_s8  ;;  %s1074_s8 = sshll.u32 %s1518_s27, 4  ;;  %p1309_p12 = scmp.ne.s32.totalorder %s1307_s14, %s1308_s24  ;;  %s1075_s8 = int_to_ptr.vmem [resolvable:$true] %s1074_s8 }
 0x281   : > { %p1310_p13 = pnand %p1309_p12, %p1458_p4 }
 0x283   : > { %p1311_p0 = pneg %p1310_p13 }
 0x2a1   : > { %840 = vxpose.xlu0.b32.start.end [1/1] (short) (narrow) %v839_v44, 8  ;;  %756 = vxpose.xlu2.b32.start.end [1/1] (short) (narrow) %v755_v39, 8 }
 0x2a2   : > { %1008 = vxpose.xlu1.b32.start.end [1/1] (short) (narrow) %v1007_v45, 8 }
 0x2a3   : > { %v516_v46 = vpop.trf.xlu2 }
 0x2a4   : > { %532 = vst.msk [vmem:[%s1528_s15 + $0x8] sm:$0xff] %vm451_vm4, %v516_v46 }
 0x2a9   : > { %924 = vxpose.xlu0.b32.start.end [1/1] (short) (narrow) %v923_v49, 8 }
 0x2b5   : > { %v600_v52 = vpop.trf.xlu0 }
 0x2b6   : > { %v684_v51 = vpop.trf.xlu1  ;;  %616 = vst.msk [vmem:[%s1528_s15 + $0x10] sm:$0xff] %vm451_vm4, %v600_v52 }
 0x2b7   : > { %700 = vst.msk [vmem:[%s1528_s15 + $0x18] sm:$0xff] %vm451_vm4, %v684_v51 }
 0x2cd   : > { %v535_v53 = vpop.permute.xlu2 %534 }
 0x2ce   : > { %538 = vst.msk [vmem:[%s1518_s27 - $0x2] sm:$0xc] %vm537_vm5, %v535_v53 }
 0x2d5   : > { %v703_v55 = vpop.permute.xlu2 %702 }
 0x2de   : > { %v791_v56 = vpop.permute.xlu1 %790 }
 0x2f1   : > { %v619_v54 = vpop.permute.xlu0 %618 }
 0x2f2   : > { %622 = vst.msk [vmem:[%s1518_s27 - $0x2] sm:$0xc] %vm621_vm6, %v619_v54 }
 0x2f3   : > { %706 = vst.msk [vmem:[%s1518_s27 - $0x2] sm:$0xc] %vm705_vm7, %v703_v55 }
 0x2f4   : > { %794 = vst.msk [vmem:[%s1518_s27 - $0x2] sm:$0xc] %vm793_vm8, %v791_v56 }
 0x30a   : > { %874 = vrot.lane.b32.xlu2 %v839_v44, %s1380_s13 }
 0x312   : > { %1042 = vrot.lane.b32.xlu2 %v1007_v45, %s1381_s16  ;;  %s1312_s16 = scalar_lea.hbm %s1598_s6, 4 }
 0x313   : > { %p1314_p2 = scmp.lt.s32.totalorder %s1312_s16, %s1308_s24 }
 0x315   : > { %p1315_p3 = por %p1314_p2, %p1313_p1 }
 0x317   : > { %958 = vrot.lane.b32.xlu0 %v923_v49, %s1382_s17  ;;  %p1316_p5 = pnand %p1315_p3, %p1311_p0 }
 0x33a   : > { %v772_v57 = vpop.trf.xlu2 }
 0x33b   : > { %788 = vst.msk [vmem:[%s1528_s15 + $0x20] sm:$0xff] %vm451_vm4, %v772_v57 }
 0x345   : > { %v856_v58 = vpop.trf.xlu0 }
 0x346   : > { %872 = vst.msk [vmem:[%s1528_s15 + $0x28] sm:$0xff] %vm451_vm4, %v856_v58  ;;  %v1024_v61 = vpop.trf.xlu1 }
 0x347   : > { %1040 = vst.msk [vmem:[%s1528_s15 + $0x38] sm:$0xff] %vm451_vm4, %v1024_v61 }
 0x34d   : > { %v940_v59 = vpop.trf.xlu0 }
 0x34e   : > { %956 = vst.msk [vmem:[%s1528_s15 + $0x30] sm:$0xff] %vm451_vm4, %v940_v59 }
 0x364   : > { %v875_v60 = vpop.permute.xlu2 %874 }
 0x365   : > { %878 = vst.msk [vmem:[%s1518_s27 - $0x2] sm:$0xc] %vm877_vm9, %v875_v60 }
 0x36c   : > { %v1043_v63 = vpop.permute.xlu2 %1042 }
 0x389   : > { %v959_v62 = vpop.permute.xlu0 %958 }
 0x38a   : > { %962 = vst.msk [vmem:[%s1518_s27 - $0x2] sm:$0xc] %vm961_vm10, %v959_v62 }
 0x38b   : > { %1046 = vst.msk [vmem:[%s1518_s27 - $0x2] sm:$0xc] %vm1045_vm11, %v1043_v63 }
 0x38c   : > { %1319 = shalt.err (!%p1316_p5)
}
 0x38d   : > { %1224 = dma.vmem_to_hbm [thread:$0]  (%p1458_p4), %s1075_s8, 32, %s1077_s11, %s1057_s12  }
 0x38e PF: > { %p1230_p6 = scmp.ge.s32.totalorder %s1370_s26, 2  ;;  %s1100_s19 = sand.u32 1, %s1350_s21  }
 0x38f   : > { %s1101_s27 = scalar_lea.sflag [#allocation3], %s1100_s19 }
 0x390   : > { %p1227_p7 = pnand %p1230_p6, %p1465_p8 }
 0x392   : > { %p1228_p9 = pneg %p1227_p7 }
 0x394   : > { %1345 = dma.done.wait (%p1228_p9), %s1101_s27, 32  }
 0x395   : > { %1347 = vsyncadd (%p1228_p9), %s1101_s27, 4294967264  ;;  %s20_s26 = sadd.s32 1, %s1370_s26   ;;  %s1601_s21 = smov %s1354_s22 }
 0x396   : > { %p17_p10 = scmp.ge.s32.totalorder %s20_s26, 4   ;;  %s1602_s22 = smov %s1358_s23 }
 0x397   : > { %s1603_s23 = smov %s1471_s10  ;;  %s1604_s24 = smov %s1366_s25 }
 0x398   : > { %s1605_s25 = smov %s1607_s29  ;;  %19 = sbr.rel (!%p17_p10) target bundleno = 4 (0x4), region = 87 }
 0x39d   :  { %1107 = vsyncpa [#allocation3], 1 }
 0x39e   :  { %1109 = vsyncpa [#allocation3 + $0x1], 1 }

</bundles_post_ra>
